<compile_context>
chip_gen: v7x
topology: tpu7x:2x2x1
jax: 0.10.0
libtpu: 0.0.40
codegen_flags: <defaults>
</compile_context>

<pallas_src>
import jax
import jax.numpy as jnp
from jax.experimental import pallas as pl
from jax.experimental.pallas import tpu as pltpu


def linear_kernel(x_ref, w_ref, b_ref, o_ref):
    # x_ref: (S, 2) in VMEM
    # w_ref: (2, 2) in SMEM (PyTorch Linear layout: (out_features, in_features))
    # b_ref: (2,)   in SMEM
    # o_ref: (S, 2) in VMEM
    x = x_ref[...]
    x0 = x[:, 0:1]  # (S, 1)
    x1 = x[:, 1:2]  # (S, 1)

    # Lane-selected weight / bias vectors (built once):
    #   w0_lane[:, n] = W[n, 0],  w1_lane[:, n] = W[n, 1],  b_lane[:, n] = b[n]
    col = jax.lax.broadcasted_iota(jnp.int32, o_ref.shape, dimension=1)
    is_col0 = col == 0
    w0_lane = jnp.where(is_col0, w_ref[0, 0], w_ref[1, 0])  # (S, 2)
    w1_lane = jnp.where(is_col0, w_ref[0, 1], w_ref[1, 1])  # (S, 2)
    b_lane = jnp.where(is_col0, b_ref[0], b_ref[1])         # (S, 2)

    # y[m, n] = x[m, 0]*W[n, 0] + x[m, 1]*W[n, 1] + b[n]  — pure VPU FMAs.
    o_ref[...] = (x0 * w0_lane + x1 * w1_lane + b_lane).astype(o_ref.dtype)


def linear_pallas(x, weight, bias):
    """y = x @ weight.T + bias over the last axis of x.

    Specialized for the module's Linear(2, 2) and batch dim of size 1.
    """
    B, S, K = x.shape
    N = weight.shape[0]
    assert B == 1 and K == 2 and N == 2
    assert weight.shape == (2, 2) and bias.shape == (2,)

    cost = pl.CostEstimate(
        flops=12 * S,  # 2 outputs/row * (2 mul + 1 add) FMA-ish, generous
        transcendentals=0,
        bytes_accessed=4 * (S * K + S * N + weight.size + bias.size),
    )

    out = pl.pallas_call(
        linear_kernel,
        out_shape=jax.ShapeDtypeStruct((B, S, N), x.dtype),
        # Single grid point; x / out as full-array VMEM blocks with the
        # size-1 batch dim squeezed away (no wrapper reshape); weight + bias
        # as SMEM scalars (no VMEM DMA, no transpose).
        in_specs=[
            pl.BlockSpec((pl.Squeezed(), S, K), lambda: (0, 0, 0)),
            pl.BlockSpec(memory_space=pltpu.MemorySpace.SMEM),
            pl.BlockSpec(memory_space=pltpu.MemorySpace.SMEM),
        ],
        out_specs=pl.BlockSpec((pl.Squeezed(), S, N), lambda: (0, 0, 0)),
        cost_estimate=cost,
    )(x, weight, bias)
    return out


class Model:
    """JAX/Pallas port of the PyTorch Model (Linear(2, 2) forward)."""

    def __init__(self, key):
        in_f, out_f = 2, 2
        kw, kb = jax.random.split(key)
        # Deterministic init mimicking nn.Linear's uniform(-1/sqrt(in), 1/sqrt(in)).
        bound = 1.0 / jnp.sqrt(jnp.float32(in_f))
        self.weight = jax.random.uniform(
            kw, (out_f, in_f), jnp.float32, minval=-bound, maxval=bound
        )
        self.bias = jax.random.uniform(
            kb, (out_f,), jnp.float32, minval=-bound, maxval=bound
        )

    def forward(self, x1):
        v1 = linear_pallas(x1, self.weight, self.bias)
        # LSTMCell branch elided (see TODO(synk) above); output unused.
        return v1


if __name__ == "__main__":
    key = jax.random.PRNGKey(0)
    k_in, k_model = jax.random.split(key)

    x1 = jax.random.normal(k_in, (1, 3, 2), dtype=jnp.float32)

    model = Model(k_model)
    out = model.forward(x1)
    out = jax.block_until_ready(out)

    # Sanity check against plain-JAX reference of the same math.
    ref = jnp.einsum("bsk,nk->bsn", x1, model.weight) + model.bias
    assert out.shape == (1, 3, 2)
    assert jnp.allclose(out, ref, atol=1e-5, rtol=1e-5)

    print("KERNEL_OK")
</pallas_src>

<mosaic_0001>
module attributes {stable_mosaic.version = 11 : i64} {
  func.func @linear_kernel(%arg0: memref<1x3x2xf32, #tpu.memory_space<vmem>>, %arg1: memref<2x2xf32, #tpu.memory_space<smem>>, %arg2: memref<2xf32, #tpu.memory_space<smem>>, %arg3: memref<1x3x2xf32, #tpu.memory_space<vmem>>) attributes {dimension_semantics = [], scalar_prefetch = 0 : i64, scratch_operands = 0 : i64, tpu.core_type = #tpu.core_type<tc>} {
    %c0 = arith.constant 0 : index
    %c0_0 = arith.constant 0 : index
    %c0_1 = arith.constant 0 : index
    %0 = vector.load %arg0[%c0, %c0_0, %c0_1] : memref<1x3x2xf32, #tpu.memory_space<vmem>>, vector<1x3x2xf32>
    %1 = vector.shape_cast %0 : vector<1x3x2xf32> to vector<3x2xf32>
    %2 = vector.extract_strided_slice %1 {offsets = [0, 0], sizes = [3, 1], strides = [1, 1]} : vector<3x2xf32> to vector<3x1xf32>
    %3 = vector.extract_strided_slice %1 {offsets = [0, 1], sizes = [3, 1], strides = [1, 1]} : vector<3x2xf32> to vector<3x1xf32>
    %4 = tpu.iota {dimensions = array<i32: 1>} : vector<3x2xi32>
    %c0_i32 = arith.constant 0 : i32
    %5 = vector.broadcast %c0_i32 : i32 to vector<3x2xi32>
    %6 = arith.cmpi eq, %4, %5 : vector<3x2xi32>
    %c0_2 = arith.constant 0 : index
    %c0_3 = arith.constant 0 : index
    %7 = memref.load %arg1[%c0_2, %c0_3] : memref<2x2xf32, #tpu.memory_space<smem>>
    %c1 = arith.constant 1 : index
    %c0_4 = arith.constant 0 : index
    %8 = memref.load %arg1[%c1, %c0_4] : memref<2x2xf32, #tpu.memory_space<smem>>
    %9 = vector.broadcast %7 : f32 to vector<3x2xf32>
    %10 = vector.broadcast %8 : f32 to vector<3x2xf32>
    %11 = arith.select %6, %9, %10 : vector<3x2xi1>, vector<3x2xf32>
    %c0_5 = arith.constant 0 : index
    %c1_6 = arith.constant 1 : index
    %12 = memref.load %arg1[%c0_5, %c1_6] : memref<2x2xf32, #tpu.memory_space<smem>>
    %c1_7 = arith.constant 1 : index
    %c1_8 = arith.constant 1 : index
    %13 = memref.load %arg1[%c1_7, %c1_8] : memref<2x2xf32, #tpu.memory_space<smem>>
    %14 = vector.broadcast %12 : f32 to vector<3x2xf32>
    %15 = vector.broadcast %13 : f32 to vector<3x2xf32>
    %16 = arith.select %6, %14, %15 : vector<3x2xi1>, vector<3x2xf32>
    %c0_9 = arith.constant 0 : index
    %17 = memref.load %arg2[%c0_9] : memref<2xf32, #tpu.memory_space<smem>>
    %c1_10 = arith.constant 1 : index
    %18 = memref.load %arg2[%c1_10] : memref<2xf32, #tpu.memory_space<smem>>
    %19 = vector.broadcast %17 : f32 to vector<3x2xf32>
    %20 = vector.broadcast %18 : f32 to vector<3x2xf32>
    %21 = arith.select %6, %19, %20 : vector<3x2xi1>, vector<3x2xf32>
    %22 = vector.broadcast %2 : vector<3x1xf32> to vector<3x2xf32>
    %23 = arith.mulf %22, %11 : vector<3x2xf32>
    %24 = vector.broadcast %3 : vector<3x1xf32> to vector<3x2xf32>
    %25 = arith.mulf %24, %16 : vector<3x2xf32>
    %26 = arith.addf %23, %25 : vector<3x2xf32>
    %27 = arith.addf %26, %21 : vector<3x2xf32>
    %c0_11 = arith.constant 0 : index
    %c0_12 = arith.constant 0 : index
    %c0_13 = arith.constant 0 : index
    %28 = vector.load %arg3[%c0_11, %c0_12, %c0_13] : memref<1x3x2xf32, #tpu.memory_space<vmem>>, vector<1x3x2xf32>
    %29 = vector.shape_cast %28 : vector<1x3x2xf32> to vector<3x2xf32>
    %30 = vector.shape_cast %27 : vector<3x2xf32> to vector<1x3x2xf32>
    tpu.vector_store %arg3[%c0_11, %c0_12, %c0_13], %30 {strides = array<i32>} : memref<1x3x2xf32, #tpu.memory_space<vmem>>, vector<1x3x2xf32>,
    return
  }
}

</mosaic_0001>

<bundles_post_ra>
// kernel: tpu_custom_call.1
= control target key start
LH: loop header
LB: loop body
LE: loop exit
PB: predicated region body
PF: predicated region fallthrough
CT: control target
= control target key end

     0   :  { %8 = vsyncpa [#allocation3], 0  ;;  %s153_s0 = inlined_call_operand.vmem [shape: f32[1,3,2], index: 0, kind: input, shape index: {}]   ;;  %s154_s1 = inlined_call_operand.vmem [shape: f32[2,2], index: 1, kind: input, shape index: {}]   ;;  %s155_s2 = inlined_call_operand.vmem [shape: f32[2], index: 2, kind: input, shape index: {}]   ;;  %s156_s3 = inlined_call_operand.vmem [shape: f32[1,3,2], index: 3, kind: output, shape index: {}]  }
   0x1   :  { %s18_s14 = sshll.u32 %s154_s1, 4  ;;  %s19_s14 = int_to_ptr.vmem [resolvable:$true] %s18_s14 }
   0x2   :  { %9 = vsyncpa [#allocation5], 0  ;;  %s28_s17 = sshll.u32 %s155_s2, 4  ;;  %s89_s18 = scalar_lea.vmem %s19_s14, 32  ;;  %s29_s17 = int_to_ptr.vmem [resolvable:$true] %s28_s17 }
   0x3   :  { %p90_p0 = scmp.ne.s32.totalorder %s19_s14, %s89_s18  ;;  %p94_p1 = scmp.lt.s32.totalorder %s19_s14, %s19_s14 }
   0x4   :  { %p95_p2 = scmp.lt.s32.totalorder %s89_s18, %s89_s18 }
   0x6   :  { %p96_p3 = por %p95_p2, %p94_p1 }
   0x8   :  { %p97_p4 = pnand %p96_p3, %p90_p0 }
   0xa   :  { %100 = shalt.err (!%p97_p4)
}
   0xb   :  { %s117_s19 = smov [#allocation2]   ;;  %s101_s20 = scalar_lea.vmem %s29_s17, 16 }
   0xc   :  { %21 = dma.vmem_to_smem %s19_s14, 32, %s117_s19, [#allocation3]  }
   0xd   :  { %p102_p5 = scmp.ne.s32.totalorder %s29_s17, %s101_s20  ;;  %p106_p6 = scmp.lt.s32.totalorder %s29_s17, %s29_s17 }
   0xe   :  { %p107_p7 = scmp.lt.s32.totalorder %s101_s20, %s101_s20 }
  0x10   :  { %p108_p8 = por %p107_p7, %p106_p6 }
  0x12   :  { %p109_p9 = pnand %p108_p8, %p102_p5 }
  0x14   :  { %112 = shalt.err (!%p109_p9)
}
  0x15   :  { %s118_s1 = smov [#allocation4]  }
  0x16   :  { %31 = dma.vmem_to_smem %s29_s17, 16, %s118_s1, [#allocation5]  }
  0x17   :  { %113 = dma.done.wait [#allocation3], 32  }
  0x18   :  { %114 = vsyncadd [#allocation3], 4294967264 }
  0x19   :  { %115 = dma.done.wait [#allocation5], 16  }
  0x1a   :  { %116 = vsyncadd [#allocation5], 4294967280 }
  0x1b   :  { %38 = sfence }
  0x1c   :  { %v39_v0 = vld [vmem:[%s153_s0] sm:$0x7]  ;;  %v119_v1 = vmov 0   ;;  %v120_v2 = vmov 1   ;;  %v40_v3 = vlaneseq  ;;  %s43_s22 = sld [smem:[#allocation2]]  ;;  %s80_s24 = sld [smem:[#allocation2 + $0x1]] }
  0x1d   :  { %87 = vset.pattern.permute.xlu0 %v119_v1  ;;  %s79_s23 = sld [smem:[#allocation2 + $0x80]]  ;;  %s81_s25 = sld [smem:[#allocation2 + $0x81]]  ;;  %vm71_vm1 = vcmask 10240  }
  0x1e   :  { %60 = vperm.xlu0 %87, %v39_v0   ;;  %v41_v4 = vand.u32 127, %v40_v3  ;;  %s53_s26 = sld [smem:[#allocation4]]  ;;  %s82_s27 = sld [smem:[#allocation4 + $0x1]] }
  0x20   :  { %vm42_vm0 = vcmp.eq.s32.totalorder %v41_v4, 0 }
  0x22   :  { %88 = vset.pattern.permute.xlu0 %v120_v2  ;;  %v45_v5 = vstv %s43_s22  ;;  %v50_v8 = vstv %s80_s24 }
  0x23   :  { %65 = vperm.xlu0 %88, %v39_v0   ;;  %v46_v6 = vstv %s79_s23  ;;  %v51_v9 = vstv %s81_s25 }
  0x24   :  { %v47_v10 = vsel %vm42_vm0, %v45_v5, %v46_v6  ;;  %v52_v11 = vsel %vm42_vm0, %v50_v8, %v51_v9  ;;  %v55_v12 = vstv %s53_s26  ;;  %v56_v13 = vstv %s82_s27 }
  0x25   :  { %v57_v17 = vsel %vm42_vm0, %v55_v12, %v56_v13 }
  0x9d   :  { %v61_v7 = vpop.permute.xlu0 %60 }
  0x9e   :  { %v63_v15 = vmul.f32 %v61_v7, %v47_v10 }
  0xa2   :  { %v66_v14 = vpop.permute.xlu0 %65 }
  0xa3   :  { %v68_v16 = vmul.f32 %v66_v14, %v52_v11 }
  0xa5   :  { %v69_v18 = vadd.f32 %v68_v16, %v63_v15 }
  0xa7   :  { %v70_v19 = vadd.f32 %v69_v18, %v57_v17 }
  0xa9   :  { %72 = vst.msk [vmem:[%s156_s3] sm:$0x7] %vm71_vm1, %v70_v19 }
  0xaa   :  { %77 = vsyncpa [#allocation3], 1 }
  0xab   :  { %78 = vsyncpa [#allocation5], 1 }

</bundles_post_ra>
